<compile_context>
chip_gen: v6e
topology: v6e:2x2x1
jax: 0.10.0
libtpu: 0.0.40
codegen_flags: <defaults>
</compile_context>

<pallas_src>
import functools

import jax
import jax.numpy as jnp
from jax.experimental import pallas as pl
from jax.experimental.pallas import tpu as pltpu

LANE = 128  # vreg lane width; pad stored feature dims to multiples of this.


def _round_up(x, m):
    return (x + m - 1) // m * m


def decoder_kernel(z_ref, h_ref, w1z_ref, w1h_ref, b1_ref, w2_ref, b2_ref, o_ref):
    """Fused MLP tile: sigmoid(relu(z@W1z + h@W1h + b1) @ W2 + b2).

    z_ref:  (TB, latent)        h_ref:  (TB, hidden)
    w1z:    (latent, Dmid_pad)  w1h:    (hidden, Dmid_pad)   b1: (1, Dmid_pad)
    w2:     (Dmid_pad, Dout_pad)                             b2: (1, Dout_pad)
    o_ref:  (TB, Dout_pad)   -- lane-dense slab, unmasked stores
    """
    # Layer 1 with the concat folded in: [z | h] @ W1  ==  z@W1_z + h@W1_h
    a = jnp.dot(z_ref[...], w1z_ref[...], preferred_element_type=jnp.float32)
    a = a + jnp.dot(h_ref[...], w1h_ref[...], preferred_element_type=jnp.float32)
    a = jnp.maximum(a + b1_ref[...], 0.0)
    # Layer 2 + sigmoid (sigmoid -> EUP, separate issue slot)
    y = jnp.dot(a, w2_ref[...], preferred_element_type=jnp.float32) + b2_ref[...]
    o_ref[...] = jax.nn.sigmoid(y).astype(o_ref.dtype)


def decoder_forward(z, h, w1z, w1h, b1, w2, b2, *, batch_tile=256):
    """One pallas_call over the full batch; returns the lane-padded output slab."""
    B, latent = z.shape
    hidden = h.shape[1]
    d_mid_p = w2.shape[0]
    d_out_p = w2.shape[1]
    tb = min(batch_tile, B)                 # demo sizes always divide evenly
    grid = (pl.cdiv(B, tb),)

    return pl.pallas_call(
        decoder_kernel,
        out_shape=jax.ShapeDtypeStruct((B, d_out_p), jnp.float32),
        grid=grid,
        in_specs=[
            pl.BlockSpec((tb, latent), lambda i: (i, 0)),       # z tile
            pl.BlockSpec((tb, hidden), lambda i: (i, 0)),       # h tile
            pl.BlockSpec((latent, d_mid_p), lambda i: (0, 0)),  # W1_z (resident)
            pl.BlockSpec((hidden, d_mid_p), lambda i: (0, 0)),  # W1_h (resident)
            pl.BlockSpec((1, d_mid_p), lambda i: (0, 0)),       # b1
            pl.BlockSpec((d_mid_p, d_out_p), lambda i: (0, 0)), # W2 (resident)
            pl.BlockSpec((1, d_out_p), lambda i: (0, 0)),       # b2
        ],
        out_specs=pl.BlockSpec((tb, d_out_p), lambda i: (i, 0)),
        compiler_params=pltpu.CompilerParams(
            dimension_semantics=("parallel",),  # shard batch tiles across TCs (v7x)
        ),
    )(z, h, w1z, w1h, b1, w2, b2)


@functools.partial(jax.jit, static_argnames=("out_dim", "hidden_dim", "batch_tile"))
def decoder_apply(params, z, key, *, out_dim, hidden_dim, batch_tile=256):
    """Full Decoder.forward: fresh h ~ N(0,1) per call, fused MLP, slice padding."""
    w1z, w1h, b1, w2, b2 = params
    B = z.shape[0]
    h = jax.random.normal(key, (B, hidden_dim), jnp.float32)  # torch.randn equivalent
    y_pad = decoder_forward(z, h, w1z, w1h, b1, w2, b2, batch_tile=batch_tile)
    return y_pad[:, :out_dim]


def make_params(key, latent_dim, hidden_dim, out_dim):
    """nn.Linear-style init (uniform +-1/sqrt(fan_in)); stored transposed
    (in_features, out_features), split at the z/h boundary, and zero-padded so
    the mid/out feature dims are multiples of 128 lanes."""
    d_in = latent_dim + hidden_dim
    d_mid = 2 * d_in
    d_mid_p = _round_up(d_mid, LANE)
    d_out_p = _round_up(out_dim, LANE)

    k1, k2, k3, k4 = jax.random.split(key, 4)
    lim1 = 1.0 / (d_in ** 0.5)
    lim2 = 1.0 / (d_mid ** 0.5)
    w1 = jax.random.uniform(k1, (d_in, d_mid), jnp.float32, -lim1, lim1)
    b1 = jax.random.uniform(k2, (1, d_mid), jnp.float32, -lim1, lim1)
    w2 = jax.random.uniform(k3, (d_mid, out_dim), jnp.float32, -lim2, lim2)
    b2 = jax.random.uniform(k4, (1, out_dim), jnp.float32, -lim2, lim2)

    # Zero-pad to lane-dense shapes (exactly semantics-preserving after slicing).
    w1_p = jnp.zeros((d_in, d_mid_p), jnp.float32).at[:, :d_mid].set(w1)
    b1_p = jnp.zeros((1, d_mid_p), jnp.float32).at[:, :d_mid].set(b1)
    w2_p = jnp.zeros((d_mid_p, d_out_p), jnp.float32).at[:d_mid, :out_dim].set(w2)
    b2_p = jnp.zeros((1, d_out_p), jnp.float32).at[:, :out_dim].set(b2)

    w1z_p = w1_p[:latent_dim]   # (latent, d_mid_p)
    w1h_p = w1_p[latent_dim:]   # (hidden, d_mid_p)
    return (w1z_p, w1h_p, b1_p, w2_p, b2_p)


if __name__ == "__main__":
    # Small config consistent with the module:
    #   config.latent_dim = 16, config.hidden_dim = 16,
    #   config.input_dim (decoder output dim) = 32, config.batch_size = 8
    latent_dim, hidden_dim, out_dim, batch = 16, 16, 32, 8

    key = jax.random.PRNGKey(0)
    k_params, k_z, k_h = jax.random.split(key, 3)

    params = make_params(k_params, latent_dim, hidden_dim, out_dim)
    w1z, w1h, b1, w2, b2 = params

    z = jax.random.normal(k_z, (batch, latent_dim), jnp.float32)

    # --- run the fused kernel (one pallas_call over the whole batch) ---------
    y = decoder_apply(params, z, k_h, out_dim=out_dim, hidden_dim=hidden_dim)
    jax.block_until_ready(y)

    # --- pure-JAX reference with the identical h draw ------------------------
    h = jax.random.normal(k_h, (batch, hidden_dim), jnp.float32)
    w1_full = jnp.concatenate([w1z, w1h], axis=0)           # (d_in, d_mid_p)
    x = jnp.concatenate([z, h], axis=-1)
    ref = jax.nn.sigmoid(jnp.maximum(x @ w1_full + b1, 0.0) @ w2 + b2)[:, :out_dim]
    assert y.shape == (batch, out_dim)
    assert jnp.allclose(y, ref, atol=1e-5, rtol=1e-5)

    # --- multi-tile batch check: many forward calls stacked into one launch --
    B2 = 256
    k_z2, k_h2 = jax.random.split(jax.random.PRNGKey(1))
    z2 = jax.random.normal(k_z2, (B2, latent_dim), jnp.float32)
    y2 = decoder_apply(params, z2, k_h2, out_dim=out_dim, hidden_dim=hidden_dim,
                       batch_tile=128)                       # grid=(2,), parallel
    jax.block_until_ready(y2)
    h2 = jax.random.normal(k_h2, (B2, hidden_dim), jnp.float32)
    x2 = jnp.concatenate([z2, h2], axis=-1)
    ref2 = jax.nn.sigmoid(jnp.maximum(x2 @ w1_full + b1, 0.0) @ w2 + b2)[:, :out_dim]
    assert jnp.allclose(y2, ref2, atol=1e-5, rtol=1e-5)

    print("KERNEL_OK")
</pallas_src>

<mosaic_0001>
module attributes {stable_mosaic.version = 11 : i64} {
  func.func @decoder_kernel(%arg0: i32, %arg1: memref<8x16xf32, #tpu.memory_space<vmem>>, %arg2: memref<8x16xf32, #tpu.memory_space<vmem>>, %arg3: memref<16x128xf32, #tpu.memory_space<vmem>>, %arg4: memref<16x128xf32, #tpu.memory_space<vmem>>, %arg5: memref<1x128xf32, #tpu.memory_space<vmem>>, %arg6: memref<128x128xf32, #tpu.memory_space<vmem>>, %arg7: memref<1x128xf32, #tpu.memory_space<vmem>>, %arg8: memref<8x128xf32, #tpu.memory_space<vmem>>) attributes {dimension_semantics = [#tpu.dimension_semantics<parallel>], iteration_bounds = array<i64: 1>, scalar_prefetch = 0 : i64, scratch_operands = 0 : i64, tpu.core_type = #tpu.core_type<tc>, window_params = [{transform_indices = @transform_0, window_bounds = array<i64: 8, 16>}, {transform_indices = @transform_1, window_bounds = array<i64: 8, 16>}, {pipeline_mode = #tpu.pipeline_mode<synchronous>, transform_indices = @transform_2, window_bounds = array<i64: 16, 128>}, {pipeline_mode = #tpu.pipeline_mode<synchronous>, transform_indices = @transform_3, window_bounds = array<i64: 16, 128>}, {pipeline_mode = #tpu.pipeline_mode<synchronous>, transform_indices = @transform_4, window_bounds = array<i64: 1, 128>}, {pipeline_mode = #tpu.pipeline_mode<synchronous>, transform_indices = @transform_5, window_bounds = array<i64: 128, 128>}, {pipeline_mode = #tpu.pipeline_mode<synchronous>, transform_indices = @transform_6, window_bounds = array<i64: 1, 128>}, {transform_indices = @transform_7, window_bounds = array<i64: 8, 128>}]} {
    %c0 = arith.constant 0 : index
    %c0_0 = arith.constant 0 : index
    %0 = vector.load %arg1[%c0, %c0_0] : memref<8x16xf32, #tpu.memory_space<vmem>>, vector<8x16xf32>
    %c0_1 = arith.constant 0 : index
    %c0_2 = arith.constant 0 : index
    %1 = vector.load %arg3[%c0_1, %c0_2] : memref<16x128xf32, #tpu.memory_space<vmem>>, vector<16x128xf32>
    %cst = arith.constant dense<0.000000e+00> : vector<8x128xf32>
    %2 = tpu.matmul %0, %1, %cst {dimension_numbers = #tpu.dot_dimension_numbers<[1], [0], [0], [1], [0, 0, 1, 1], [], []>} : vector<8x16xf32>, vector<16x128xf32>, vector<8x128xf32> -> vector<8x128xf32>
    %c0_3 = arith.constant 0 : index
    %c0_4 = arith.constant 0 : index
    %3 = vector.load %arg2[%c0_3, %c0_4] : memref<8x16xf32, #tpu.memory_space<vmem>>, vector<8x16xf32>
    %c0_5 = arith.constant 0 : index
    %c0_6 = arith.constant 0 : index
    %4 = vector.load %arg4[%c0_5, %c0_6] : memref<16x128xf32, #tpu.memory_space<vmem>>, vector<16x128xf32>
    %cst_7 = arith.constant dense<0.000000e+00> : vector<8x128xf32>
    %5 = tpu.matmul %3, %4, %cst_7 {dimension_numbers = #tpu.dot_dimension_numbers<[1], [0], [0], [1], [0, 0, 1, 1], [], []>} : vector<8x16xf32>, vector<16x128xf32>, vector<8x128xf32> -> vector<8x128xf32>
    %6 = arith.addf %2, %5 : vector<8x128xf32>
    %c0_8 = arith.constant 0 : index
    %c0_9 = arith.constant 0 : index
    %7 = vector.load %arg5[%c0_8, %c0_9] : memref<1x128xf32, #tpu.memory_space<vmem>>, vector<1x128xf32>
    %8 = vector.broadcast %7 : vector<1x128xf32> to vector<8x128xf32>
    %9 = arith.addf %6, %8 : vector<8x128xf32>
    %cst_10 = arith.constant 0.000000e+00 : f32
    %10 = vector.broadcast %cst_10 : f32 to vector<8x128xf32>
    %11 = arith.maximumf %9, %10 : vector<8x128xf32>
    %c0_11 = arith.constant 0 : index
    %c0_12 = arith.constant 0 : index
    %12 = vector.load %arg6[%c0_11, %c0_12] : memref<128x128xf32, #tpu.memory_space<vmem>>, vector<128x128xf32>
    %cst_13 = arith.constant dense<0.000000e+00> : vector<8x128xf32>
    %13 = tpu.matmul %11, %12, %cst_13 {dimension_numbers = #tpu.dot_dimension_numbers<[1], [0], [0], [1], [0, 0, 1, 1], [], []>} : vector<8x128xf32>, vector<128x128xf32>, vector<8x128xf32> -> vector<8x128xf32>
    %c0_14 = arith.constant 0 : index
    %c0_15 = arith.constant 0 : index
    %14 = vector.load %arg7[%c0_14, %c0_15] : memref<1x128xf32, #tpu.memory_space<vmem>>, vector<1x128xf32>
    %15 = vector.broadcast %14 : vector<1x128xf32> to vector<8x128xf32>
    %16 = arith.addf %13, %15 : vector<8x128xf32>
    %17 = arith.negf %16 : vector<8x128xf32>
    %18 = math.exp %17 : vector<8x128xf32>
    %cst_16 = arith.constant 1.000000e+00 : f32
    %19 = vector.broadcast %cst_16 : f32 to vector<8x128xf32>
    %20 = arith.addf %19, %18 : vector<8x128xf32>
    %21 = arith.divf %19, %20 : vector<8x128xf32>
    %c0_17 = arith.constant 0 : index
    %c0_18 = arith.constant 0 : index
    %22 = vector.load %arg8[%c0_17, %c0_18] : memref<8x128xf32, #tpu.memory_space<vmem>>, vector<8x128xf32>
    tpu.vector_store %arg8[%c0_17, %c0_18], %21 {strides = array<i32>} : memref<8x128xf32, #tpu.memory_space<vmem>>, vector<8x128xf32>,
    return
  }
  func.func @transform_0(%arg0: i32) -> (i32, i32) {
    %c0_i32 = arith.constant 0 : i32
    %c0_i32_0 = arith.constant 0 : i32
    return %arg0, %c0_i32 : i32, i32
  }
  func.func @transform_1(%arg0: i32) -> (i32, i32) {
    %c0_i32 = arith.constant 0 : i32
    %c0_i32_0 = arith.constant 0 : i32
    return %arg0, %c0_i32 : i32, i32
  }
  func.func @transform_2(%arg0: i32) -> (i32, i32) {
    %c0_i32 = arith.constant 0 : i32
    %c0_i32_0 = arith.constant 0 : i32
    %c0_i32_1 = arith.constant 0 : i32
    return %c0_i32, %c0_i32_0 : i32, i32
  }
  func.func @transform_3(%arg0: i32) -> (i32, i32) {
    %c0_i32 = arith.constant 0 : i32
    %c0_i32_0 = arith.constant 0 : i32
    %c0_i32_1 = arith.constant 0 : i32
    return %c0_i32, %c0_i32_0 : i32, i32
  }
  func.func @transform_4(%arg0: i32) -> (i32, i32) {
    %c0_i32 = arith.constant 0 : i32
    %c0_i32_0 = arith.constant 0 : i32
    %c0_i32_1 = arith.constant 0 : i32
    return %c0_i32, %c0_i32_0 : i32, i32
  }
  func.func @transform_5(%arg0: i32) -> (i32, i32) {
    %c0_i32 = arith.constant 0 : i32
    %c0_i32_0 = arith.constant 0 : i32
    %c0_i32_1 = arith.constant 0 : i32
    return %c0_i32, %c0_i32_0 : i32, i32
  }
  func.func @transform_6(%arg0: i32) -> (i32, i32) {
    %c0_i32 = arith.constant 0 : i32
    %c0_i32_0 = arith.constant 0 : i32
    %c0_i32_1 = arith.constant 0 : i32
    return %c0_i32, %c0_i32_0 : i32, i32
  }
  func.func @transform_7(%arg0: i32) -> (i32, i32) {
    %c0_i32 = arith.constant 0 : i32
    %c0_i32_0 = arith.constant 0 : i32
    return %arg0, %c0_i32 : i32, i32
  }
}

</mosaic_0001>

<bundles_post_ra>
// kernel: decoder_apply.1
= control target key start
LH: loop header
LB: loop body
LE: loop exit
PB: predicated region body
PF: predicated region fallthrough
CT: control target
= control target key end

     0   :  { %12 = vsyncpa [#allocation3], 0  ;;  %s590_s0 = inlined_call_operand.hbm [shape: f32[8,16], index: 0, kind: input, shape index: {}]   ;;  %s591_s1 = inlined_call_operand.vmem [shape: f32[8,16], index: 1, kind: input, shape index: {}]   ;;  %s592_s2 = inlined_call_operand.vmem [shape: f32[16,128], index: 2, kind: input, shape index: {}]   ;;  %s593_s3 = inlined_call_operand.vmem [shape: f32[16,128], index: 3, kind: input, shape index: {}]   ;;  %s594_s4 = inlined_call_operand.vmem [shape: f32[1,128], index: 4, kind: input, shape index: {}]   ;;  %s595_s5 = inlined_call_operand.hbm [shape: f32[128,128], index: 5, kind: input, shape index: {}]   ;;  %s596_s6 = inlined_call_operand.vmem [shape: f32[1,128], index: 6, kind: input, shape index: {}]   ;;  %s597_s7 = inlined_call_operand.hbm [shape: f32[8,128], index: 7, kind: output, shape index: {}]  }
   0x1   :  { %13 = vsyncpa [#allocation6], 0 }
   0x2   :  { %14 = vsyncpa [#allocation4], 0  ;;  %s485_s24 = smov [#allocation2]   ;;  %s486_s26 = smov [#allocation5]  }
   0x3   :  { %s21_s25 = sshll.u32 %s485_s24, 4  ;;  %s38_s27 = sshll.u32 %s486_s26, 4  ;;  %s22_s25 = int_to_ptr.vmem [resolvable:$true] %s21_s25  ;;  %s39_s27 = int_to_ptr.vmem [resolvable:$true] %s38_s27 }
   0x4   :  { %s427_s28 = scalar_lea.vmem %s22_s25, 128  ;;  %p432_p1 = scmp.lt.s32.totalorder %s22_s25, %s22_s25 }
   0x5   :  { %p428_p0 = scmp.ne.s32.totalorder %s22_s25, %s427_s28  ;;  %p433_p2 = scmp.lt.s32.totalorder %s427_s28, %s427_s28 }
   0x7   :  { %p434_p3 = por %p433_p2, %p432_p1 }
   0x9   :  { %p435_p4 = pnand %p434_p3, %p428_p0 }
   0xb   :  { %438 = shalt.err (!%p435_p4)
}
   0xc   :  { %24 = dma.hbm_to_vmem [thread:$0]  %s590_s0, 128, %s22_s25, [#allocation3]  }
   0xd   :  { %s447_s8 = scalar_lea.vmem %s39_s27, 2048  ;;  %p452_p6 = scmp.lt.s32.totalorder %s39_s27, %s39_s27 }
   0xe   :  { %p448_p5 = scmp.ne.s32.totalorder %s39_s27, %s447_s8  ;;  %p453_p7 = scmp.lt.s32.totalorder %s447_s8, %s447_s8 }
  0x10   :  { %p454_p8 = por %p453_p7, %p452_p6 }
  0x12   :  { %p455_p9 = pnand %p454_p8, %p448_p5 }
  0x14   :  { %458 = shalt.err (!%p455_p9)
}
  0x15   :  { %s487_s9 = smov 128   ;;  %s488_s10 = smov 8  }
  0x16   :  { %44 = dma.hbm_to_vmem [thread:$0]  %s595_s5, 2048, %s39_s27, [#allocation6], %s487_s9, %s487_s9, %s488_s10  }
  0x17   :  { %479 = dma.done.wait [#allocation3], 128  }
  0x18   :  { %480 = vsyncadd [#allocation3], 4294967168 }
  0x19   :  { %481 = dma.done.wait [#allocation6], 2048  }
  0x1a   :  { %482 = vsyncadd [#allocation6], 4294965248  ;;  %v489_v0 = vmov 0.0   ;;  %vm490_vm0 = vmmov 0   ;;  %v58_v1 = vld [vmem:[%s593_s3 + $0x8] sm:$0xff]  ;;  %v57_v2 = vld [vmem:[%s593_s3] sm:$0xff] }
  0x1b   :  { %359 = vmatprep.subr.mxu1 %v489_v0  ;;  %363 = vmatprep.mubr.msk.f32.mxu1 %vm490_vm0, %v489_v0  ;;  %v56_v3 = vld [vmem:[%s591_s1] sm:$0xff]  ;;  %vm59_vm1 = vcmask 130048   ;;  %v55_v4 = vld [vmem:[%s592_s2 + $0x8] sm:$0xff]  ;;  %v229_v7 = vld [vmem:[#allocation5 + $0x70] sm:$0xff]  ;;  %s491_s22 = smov [#allocation7]  }
  0x1c   :  { %373 = vmatprep.subr.mxu0 %v489_v0  ;;  %405 = vmatprep.mubr.msk.f32.mxu0 %vm490_vm0, %v489_v0  ;;  %v230_v5 = vld [vmem:[#allocation5 + $0x78] sm:$0xff]  ;;  %v228_v9 = vld [vmem:[#allocation5 + $0x68] sm:$0xff]  ;;  %v227_v10 = vld [vmem:[#allocation5 + $0x60] sm:$0xff]  ;;  %s321_s23 = sshll.u32 %s491_s22, 4  ;;  %s322_s23 = int_to_ptr.vmem [resolvable:$true] %s321_s23 }
  0x1d   :  { %360 = vmatpush3.msra.mxu1 %v58_v1  ;;  %374 = vmatpush3.msra.mxu0 %v230_v5  ;;  %v54_v6 = vld [vmem:[%s592_s2] sm:$0xff]  ;;  %v225_v12 = vld [vmem:[#allocation5 + $0x50] sm:$0xff]  ;;  %v224_v13 = vld [vmem:[#allocation5 + $0x48] sm:$0xff]  ;;  %p464_p11 = scmp.lt.s32.totalorder %s322_s23, %s322_s23 }
  0x1e   :  { %361 = vmatprep.subr.mxu1 %v489_v0  ;;  %v53_v8 = vld [vmem:[#allocation2] sm:$0xff]  ;;  %375 = vmatprep.subr.mxu0 %v489_v0  ;;  %v223_v14 = vld [vmem:[#allocation5 + $0x40] sm:$0xff]  ;;  %v221_v16 = vld [vmem:[#allocation5 + $0x30] sm:$0xff] }
  0x1f   :  { %362 = vmatpush3.msra.mxu1 %v57_v2  ;;  %376 = vmatpush3.msra.mxu0 %v229_v7  ;;  %v226_v11 = vld [vmem:[#allocation5 + $0x58] sm:$0xff]  ;;  %v220_v17 = vld [vmem:[#allocation5 + $0x28] sm:$0xff]  ;;  %v219_v18 = vld [vmem:[#allocation5 + $0x20] sm:$0xff] }
  0x20   :  { %364 = vmatmul.mubr.msk.f32.vlgmr.msra.gmra.mxu1 %vm59_vm1, %v56_v3  ;;  %366 = vmatprep.subr.mxu1 %v489_v0  ;;  %v222_v15 = vld [vmem:[#allocation5 + $0x38] sm:$0xff]  ;;  %v217_v20 = vld [vmem:[#allocation5 + $0x10] sm:$0xff]  ;;  %v216_v21 = vld [vmem:[#allocation5 + $0x8] sm:$0xff] }
  0x21   :  { %367 = vmatpush3.msra.mxu1 %v55_v4  ;;  %370 = vmatprep.mubr.msk.f32.mxu1 %vm490_vm0, %v489_v0  ;;  %v218_v19 = vld [vmem:[#allocation5 + $0x18] sm:$0xff]  ;;  %v215_v22 = vld [vmem:[#allocation5] sm:$0xff] }
  0x22   :  { %368 = vmatprep.subr.mxu1 %v489_v0  ;;  %377 = vmatprep.subr.mxu0 %v489_v0  ;;  %v333_v26 = vld [vmem:[%s594_s4] ss:$0 sm:$0xff]  ;;  %s459_s4 = scalar_lea.vmem %s322_s23, 128 }
  0x23   :  { %369 = vmatpush3.msra.mxu1 %v54_v6  ;;  %378 = vmatpush3.msra.mxu0 %v228_v9  ;;  %v334_v31 = vld [vmem:[%s596_s6] ss:$0 sm:$0xff]  ;;  %p460_p10 = scmp.ne.s32.totalorder %s322_s23, %s459_s4  ;;  %p465_p12 = scmp.lt.s32.totalorder %s459_s4, %s459_s4 }
  0x24   :  { %371 = vmatmul.mubr.msk.f32.vlgmr.msra.gmra.mxu1 %vm59_vm1, %v53_v8  ;;  %379 = vmatprep.subr.mxu0 %v489_v0 }
  0x25   :  { %380 = vmatpush3.msra.mxu0 %v227_v10  ;;  %p466_p13 = por %p465_p12, %p464_p11 }
  0x26   :  { %381 = vmatprep.subr.mxu0 %v489_v0 }
  0x27   :  { %382 = vmatpush3.msra.mxu0 %v226_v11  ;;  %p467_p0 = pnand %p466_p13, %p460_p10 }
  0x28   :  { %383 = vmatprep.subr.mxu0 %v489_v0 }
  0x29   :  { %384 = vmatpush3.msra.mxu0 %v225_v12 }
  0x2a   :  { %385 = vmatprep.subr.mxu0 %v489_v0 }
  0x2b   :  { %386 = vmatpush3.msra.mxu0 %v224_v13 }
  0x2c   :  { %387 = vmatprep.subr.mxu0 %v489_v0 }
  0x2d   :  { %388 = vmatpush3.msra.mxu0 %v223_v14 }
  0x2e   :  { %389 = vmatprep.subr.mxu0 %v489_v0 }
  0x2f   :  { %390 = vmatpush3.msra.mxu0 %v222_v15 }
  0x30   :  { %391 = vmatprep.subr.mxu0 %v489_v0 }
  0x31   :  { %392 = vmatpush3.msra.mxu0 %v221_v16 }
  0x32   :  { %393 = vmatprep.subr.mxu0 %v489_v0 }
  0x33   :  { %394 = vmatpush3.msra.mxu0 %v220_v17 }
  0x34   :  { %395 = vmatprep.subr.mxu0 %v489_v0 }
  0x35   :  { %396 = vmatpush3.msra.mxu0 %v219_v18 }
  0x36   :  { %397 = vmatprep.subr.mxu0 %v489_v0 }
  0x37   :  { %398 = vmatpush3.msra.mxu0 %v218_v19 }
  0x38   :  { %399 = vmatprep.subr.mxu0 %v489_v0 }
  0x39   :  { %400 = vmatpush3.msra.mxu0 %v217_v20 }
  0x3a   :  { %401 = vmatprep.subr.mxu0 %v489_v0 }
  0x3b   :  { %402 = vmatpush3.msra.mxu0 %v216_v21 }
  0x3c   :  { %403 = vmatprep.subr.mxu0 %v489_v0 }
  0x3d   :  { %404 = vmatpush3.msra.mxu0 %v215_v22 }
  0xe0   :  { %v129_v23 = vpop.f32.mrf.mxu1 }
  0xe2   :  { %v365_v24 = vpop.f32.mrf.mxu1 }
  0xe4   :  { %v202_v25 = vpop.f32.mrf.mxu1 }
  0xe5   :  { %v203_v27 = vadd.f32 %v202_v25, %v129_v23 }
  0xe6   :  { %v372_v28 = vpop.f32.mrf.mxu1 }
  0xe7   :  { %v213_v29 = vadd.f32 %v333_v26, %v203_v27 }
  0xe9   :  { %v214_v30 = vmax.f32 %v213_v29, 0.0 }
  0xeb   :  { %406 = vmatmul.mubr.f32.vlgmr.msra.gmra.mxu0 %v214_v30 }
 0x1ab   :  { %v304_v32 = vpop.f32.mrf.mxu0 }
 0x1ac   :  { %v305_v33 = vadd.f32 %v334_v31, %v304_v32 }
 0x1ad   :  { %v407_v34 = vpop.f32.mrf.mxu0 }
 0x1ae   :  { %v335_v35 = vmul.f32 -1.442695, %v305_v33 }
 0x1b0   :  { %415 = vpow2.f32 %v335_v35 }
 0x1bd   :  { %v416_v36 = vpop.eup %415 }
 0x1be   :  { %v311_v37 = vadd.f32 1.0, %v416_v36 }
 0x1c0   :  { %417 = vrcp.f32 %v311_v37 }
 0x1cd   :  { %v418_v38 = vpop.eup %417 }
 0x1ce   :  { %314 = vst [vmem:[#allocation7] sm:$0xff] %v418_v38 }
 0x1cf   :  { %470 = shalt.err (!%p467_p0)
}
 0x1d0   :  { %324 = dma.vmem_to_hbm [thread:$0]  %s322_s23, 128, %s597_s7, [#allocation4]  }
 0x1d1   :  { %483 = dma.done.wait [#allocation4], 128  }
 0x1d2   :  { %484 = vsyncadd [#allocation4], 4294967168 }
 0x1d3   :  { %328 = vsyncpa [#allocation3], 1 }
 0x1d4   :  { %329 = vsyncpa [#allocation6], 1 }
 0x1d5   :  { %330 = vsyncpa [#allocation4], 1 }

</bundles_post_ra>
